<compile_context>
chip_gen: v5e
topology: v5e:2x2
jax: 0.10.0
libtpu: 0.0.40
codegen_flags: <defaults>
</compile_context>

<pallas_src>
import functools

import jax
import jax.numpy as jnp
from jax.experimental import pallas as pl
from jax.experimental.pallas import tpu as pltpu

LANES = 128  # f32 lane width; every packed row is padded to this


def _elu(x):
    # exp(min(x,0)) keeps the discarded branch finite (no inf intermediates).
    return jnp.where(x > 0, x, jnp.exp(jnp.minimum(x, 0.0)) - 1.0)


# ---------------------------------------------------------------------------
# Wrapper-side packing + hoisting (done once per solve)
# ---------------------------------------------------------------------------
def pack_ode_params(test_mu, test_t, test_f, params, lanes=LANES):
    """Precompute constant pieces and pack them into one (R, 128) f32 buffer.

    Row layout (all column-padded to `lanes` with zeros):
      row 0              : W1_t                       (1, H)
      row 1              : bias1' = test_mu @ W1_mu + b1
      row 2              : b2
      row 3              : b3
      rows  8..  8+128   : W1_y  zero-padded to (128, 128)
      rows 136..136+128  : W2    zero-padded to (128, 128)
      rows 264..264+128  : W3    zero-padded to (128, 128)
      rows 392..392+128  : Ff = f_grid @ W1_f  zero-padded to (128, 128)
    """
    (w1mu, w1t, w1y, w1f, b1, w2, b2, w3, b3) = [
        jnp.asarray(p, jnp.float32) for p in params
    ]
    H = w2.shape[0]
    dim_z = w1y.shape[0]
    t_grid = jnp.asarray(test_t, jnp.float32).reshape(-1)
    n_t = t_grid.shape[0]
    f_grid = jnp.asarray(test_f, jnp.float32).reshape(n_t, -1)
    mu_row = jnp.asarray(test_mu, jnp.float32).reshape(1, -1)

    assert n_t <= lanes and H <= lanes and dim_z <= lanes

    # Hoisted: constant for every drift evaluation of the solve.
    bias1p = mu_row @ w1mu + b1            # (1, H)   mu contribution folded in
    Ff = f_grid @ w1f                      # (n_t, H) forcing pre-projected

    def pad2(x, rows=lanes, cols=lanes):
        return jnp.pad(x, ((0, rows - x.shape[0]), (0, cols - x.shape[1])))

    hdr = jnp.zeros((8, lanes), jnp.float32)
    hdr = hdr.at[0, :H].set(w1t.reshape(-1))
    hdr = hdr.at[1, :H].set(bias1p.reshape(-1))
    hdr = hdr.at[2, :H].set(b2.reshape(-1))
    hdr = hdr.at[3, :dim_z].set(b3.reshape(-1))

    off = {"w1t": 0, "b1p": 1, "b2": 2, "b3": 3}
    r = 8
    off["w1y"] = r; r += lanes
    off["w2"] = r;  r += lanes
    off["w3"] = r;  r += lanes
    off["Ff"] = r;  r += lanes

    packed = jnp.concatenate(
        [hdr, pad2(w1y), pad2(w2), pad2(w3), pad2(Ff)], axis=0)   # (r, 128)

    meta = dict(lanes=lanes, n_t=n_t, H=H, dim_z=dim_z, off=off,
                # unpadded hoisted pieces used by the wrapper to build the
                # per-step row1 table for ode_solve
                t_grid=t_grid, Ff=Ff, b1p=bias1p, w1t_row=w1t.reshape(1, -1))
    return packed, meta


def _row1_table(t0, dt, n_steps, meta):
    """Precompute row1_k = bias1' + t_k*W1_t + lerp(Ff, t_k) for all Euler steps.

    Pure JAX, runs once in the wrapper (hoists all t-only / forcing work out of
    the serial per-step dependent chain).  Returns (n_steps_pad, 128) f32.
    """
    L = meta["lanes"]; H = meta["H"]
    tg = meta["t_grid"]; n_t = tg.shape[0]
    ks = jnp.arange(n_steps, dtype=jnp.float32)
    ts = jnp.float32(t0) + jnp.float32(dt) * ks                      # (n_steps,)
    idx = jnp.clip(jnp.searchsorted(tg, ts, side="right") - 1, 0, n_t - 2)
    tg0, tg1 = tg[idx], tg[idx + 1]
    denom = jnp.where(tg1 == tg0, 1.0, tg1 - tg0)
    w = ((ts - tg0) / denom)[:, None]                                # (n_steps,1)
    Ff = meta["Ff"]
    f_rows = Ff[idx] + w * (Ff[idx + 1] - Ff[idx])                   # (n_steps,H)
    row1 = meta["b1p"] + ts[:, None] * meta["w1t_row"] + f_rows      # (n_steps,H)
    ns_pad = ((n_steps + 7) // 8) * 8
    out = jnp.zeros((ns_pad, L), jnp.float32)
    return out.at[:n_steps, :H].set(row1)


def _pad_y(y, lanes=LANES):
    B, dz = y.shape
    return jnp.pad(jnp.asarray(y, jnp.float32), ((0, 0), (0, lanes - dz)))


# ---------------------------------------------------------------------------
# Kernels
# ---------------------------------------------------------------------------
def _mlp_tail(h0, packed_ref, off, L):
    """ELU -> dot(W2)+b2 -> ELU -> dot(W3)+b3, weights streamed from VMEM refs."""
    f32 = jnp.float32
    h = _elu(h0)
    h = (jnp.dot(h, packed_ref[off["w2"]:off["w2"] + L, :],
                 preferred_element_type=f32)
         + packed_ref[off["b2"]:off["b2"] + 1, :])
    h = _elu(h)
    return (jnp.dot(h, packed_ref[off["w3"]:off["w3"] + L, :],
                    preferred_element_type=f32)
            + packed_ref[off["b3"]:off["b3"] + 1, :])


def _ode_forward_kernel(t_ref, tg_ref, y_ref, packed_ref, out_ref, *, meta):
    """One drift evaluation at an arbitrary time t (== ODE.forward(t, y))."""
    f32 = jnp.float32
    off = meta["off"]
    n_t = meta["n_t"]
    L = meta["lanes"]
    t = t_ref[0, 0]

    # --- linterp cell search on the scalar unit (grid lives in SMEM) --------
    def count(i, acc):
        return acc + (t >= tg_ref[i]).astype(jnp.int32)
    idx = jax.lax.fori_loop(0, n_t, count, jnp.int32(0)) - 1
    idx = jnp.clip(idx, 0, n_t - 2)                 # boundary-cell extrapolation
    t0 = tg_ref[idx]
    t1 = tg_ref[idx + 1]
    den_s = t1 - t0

    # Two pre-projected forcing rows Ff[idx], Ff[idx+1]; VPU lerp (no matmul).
    f_rows = packed_ref[pl.ds(off["Ff"] + idx, 2), :]               # (2, L)
    num = jnp.full((1, 1), t - t0, dtype=f32)
    den = jnp.full((1, 1), den_s, dtype=f32)
    den = jnp.where(den == 0.0, 1.0, den)
    w = num / den                                                   # (1, 1)
    f_row = f_rows[0:1, :] + w * (f_rows[1:2, :] - f_rows[0:1, :])  # (1, L)

    # layer 1: y@W1_y + t*W1_t + fi@W1_f + (mu@W1_mu + b1); mu/b1 pre-folded.
    row1 = (packed_ref[off["b1p"]:off["b1p"] + 1, :]
            + t * packed_ref[off["w1t"]:off["w1t"] + 1, :]
            + f_row)
    h = (jnp.dot(y_ref[...], packed_ref[off["w1y"]:off["w1y"] + L, :],
                 preferred_element_type=f32) + row1)
    out_ref[...] = _mlp_tail(h, packed_ref, off, L)


def _ode_solve_kernel(dt_ref, y0_ref, row1_ref, packed_ref, yT_ref, *,
                      meta, n_steps):
    """Whole explicit-Euler time loop inside one kernel.

    All t-only layer-1 work is precomputed in row1_ref; weights stay in VMEM
    and are streamed into the MXU inside the loop body (no long live ranges).
    y is carried lane-dense as (B, 128).
    """
    f32 = jnp.float32
    off = meta["off"]
    L = meta["lanes"]
    dt = dt_ref[0, 0]

    def body(k, y):
        h = (jnp.dot(y, packed_ref[off["w1y"]:off["w1y"] + L, :],
                     preferred_element_type=f32)
             + row1_ref[pl.ds(k, 1), :])
        dy = _mlp_tail(h, packed_ref, off, L)       # padded lanes stay zero
        return y + dt * dy

    yT_ref[...] = jax.lax.fori_loop(0, n_steps, body, y0_ref[...], unroll=4)


# ---------------------------------------------------------------------------
# Wrappers
# ---------------------------------------------------------------------------
_SMEM = pl.BlockSpec(memory_space=pltpu.MemorySpace.SMEM)
_VMEM = pl.BlockSpec(memory_space=pltpu.MemorySpace.VMEM)


def _cost(B, meta, bytes_accessed, n_evals):
    L = meta["lanes"]
    flops_per_eval = 2 * 3 * B * L * L
    return pl.CostEstimate(
        flops=n_evals * flops_per_eval,
        transcendentals=n_evals * 2 * B * L,
        bytes_accessed=int(bytes_accessed),
    )


def ode_forward(t, y, packed, meta):
    """Equivalent of ODE.forward(t, y). t: (1,1); y: (B, dim_z)."""
    y = jnp.asarray(y, jnp.float32)
    B, dim_z = y.shape
    L = meta["lanes"]
    t_s = jnp.asarray(t, jnp.float32).reshape(1, 1)
    out = pl.pallas_call(
        functools.partial(_ode_forward_kernel, meta=meta),
        out_shape=jax.ShapeDtypeStruct((B, L), jnp.float32),
        in_specs=[_SMEM, _SMEM, _VMEM, _VMEM],
        out_specs=_VMEM,
        cost_estimate=_cost(B, meta, packed.size * 4 + 2 * B * L * 4, 1),
    )(t_s, meta["t_grid"], _pad_y(y, L), packed)
    return out[:, :dim_z]


def ode_solve(t0, dt, n_steps, y0, packed, meta):
    """Explicit-Euler integration of the ODE, entirely inside one kernel."""
    y0 = jnp.asarray(y0, jnp.float32)
    B, dim_z = y0.shape
    L = meta["lanes"]
    n_steps = int(n_steps)
    row1_tab = _row1_table(t0, dt, n_steps, meta)           # hoisted t-only work
    dt_s = jnp.array([[dt]], dtype=jnp.float32)
    out = pl.pallas_call(
        functools.partial(_ode_solve_kernel, meta=meta, n_steps=n_steps),
        out_shape=jax.ShapeDtypeStruct((B, L), jnp.float32),
        in_specs=[_SMEM, _VMEM, _VMEM, _VMEM],
        out_specs=_VMEM,
        cost_estimate=_cost(
            B, meta,
            packed.size * 4 + row1_tab.size * 4 + 2 * B * L * 4, n_steps),
    )(dt_s, _pad_y(y0, L), row1_tab, packed)
    return out[:, :dim_z]


# ---------------------------------------------------------------------------
# Pure-JAX references for verification
# ---------------------------------------------------------------------------
def _elu_ref(x):
    return jnp.where(x > 0, x, jnp.exp(jnp.minimum(x, 0.0)) - 1.0)


def ode_forward_ref(t, y, test_mu, test_t, test_f, params):
    (w1mu, w1t, w1y, w1f, b1, w2, b2, w3, b3) = params
    B = y.shape[0]
    hp = jax.lax.Precision.HIGHEST
    dot = lambda a, b: jnp.dot(a, b, precision=hp)

    t_q = jnp.broadcast_to(jnp.asarray(t, jnp.float32).reshape(1, 1), (B, 1))
    mu = jnp.broadcast_to(test_mu, (B, test_mu.shape[1]))
    tg = jnp.asarray(test_t, jnp.float32).reshape(-1)
    n_t = tg.shape[0]
    fg = jnp.asarray(test_f, jnp.float32).reshape(n_t, -1)

    tq1 = t_q[:, 0]
    idx = jnp.clip(jnp.searchsorted(tg, tq1, side="right") - 1, 0, n_t - 2)
    t0, t1 = tg[idx], tg[idx + 1]
    f0, f1 = fg[idx], fg[idx + 1]
    w = ((tq1 - t0) / (t1 - t0))[:, None]
    fi = f0 + w * (f1 - f0)

    h = _elu_ref(dot(mu, w1mu) + dot(t_q, w1t) + dot(y, w1y) + dot(fi, w1f) + b1)
    h = _elu_ref(dot(h, w2) + b2)
    return dot(h, w3) + b3


def ode_solve_ref(t0, dt, n_steps, y0, test_mu, test_t, test_f, params):
    y = y0
    for k in range(n_steps):
        t = t0 + dt * float(k)
        y = y + dt * ode_forward_ref(t, y, test_mu, test_t, test_f, params)
    return y


# ---------------------------------------------------------------------------
if __name__ == "__main__":
    B = 8          # batch of ODE states
    dim_z = 16     # latent state dim
    dim_mu = 2     # parameter dim
    dim_f = 4      # forcing dim
    n_t = 64       # forcing time grid length
    H = 32         # drift hidden width

    key = jax.random.PRNGKey(0)
    keys = jax.random.split(key, 12)

    y = jax.random.normal(keys[0], (B, dim_z), jnp.float32)
    t = jnp.full((1, 1), 0.37, jnp.float32)
    test_mu = jax.random.normal(keys[1], (1, dim_mu), jnp.float32)
    test_t = jnp.linspace(0.0, 1.0, n_t, dtype=jnp.float32).reshape(1, n_t)
    test_f = jax.random.normal(keys[2], (1, n_t, dim_f), jnp.float32)

    s = 0.1
    w1mu = s * jax.random.normal(keys[3], (dim_mu, H), jnp.float32)
    w1t = s * jax.random.normal(keys[4], (1, H), jnp.float32)
    w1y = s * jax.random.normal(keys[5], (dim_z, H), jnp.float32)
    w1f = s * jax.random.normal(keys[6], (dim_f, H), jnp.float32)
    b1 = s * jax.random.normal(keys[7], (1, H), jnp.float32)
    w2 = s * jax.random.normal(keys[8], (H, H), jnp.float32)
    b2 = s * jax.random.normal(keys[9], (1, H), jnp.float32)
    w3 = s * jax.random.normal(keys[10], (H, dim_z), jnp.float32)
    b3 = s * jax.random.normal(keys[11], (1, dim_z), jnp.float32)
    params = (w1mu, w1t, w1y, w1f, b1, w2, b2, w3, b3)

    packed, meta = pack_ode_params(test_mu, test_t, test_f, params)

    # 1) single drift evaluation == ODE.forward(t, y)
    out = jax.block_until_ready(ode_forward(t, y, packed, meta))
    ref = ode_forward_ref(t, y, test_mu, test_t, test_f, params)
    assert out.shape == (B, dim_z)
    assert jnp.allclose(out, ref, rtol=1e-4, atol=1e-4), (
        f"forward max abs diff {float(jnp.max(jnp.abs(out - ref)))}")

    # 2) in-kernel explicit-Euler solve (amortizes launch + weight DMA over steps)
    n_steps, t0, dt = 32, 0.0, 0.02
    yT = jax.block_until_ready(ode_solve(t0, dt, n_steps, y, packed, meta))
    yT_ref = ode_solve_ref(t0, dt, n_steps, y, test_mu, test_t, test_f, params)
    assert yT.shape == (B, dim_z)
    assert jnp.allclose(yT, yT_ref, rtol=1e-3, atol=1e-3), (
        f"solve max abs diff {float(jnp.max(jnp.abs(yT - yT_ref)))}")

    print("KERNEL_OK")
</pallas_src>

<mosaic_0001>
module attributes {stable_mosaic.version = 11 : i64} {
  func.func @_ode_forward_kernel(%arg0: memref<1x1xf32, #tpu.memory_space<smem>>, %arg1: memref<64xf32, #tpu.memory_space<smem>>, %arg2: memref<8x128xf32, #tpu.memory_space<vmem>>, %arg3: memref<520x128xf32, #tpu.memory_space<vmem>>, %arg4: memref<8x128xf32, #tpu.memory_space<vmem>>) attributes {dimension_semantics = [], scalar_prefetch = 0 : i64, scratch_operands = 0 : i64, tpu.core_type = #tpu.core_type<tc>} {
    %c0 = arith.constant 0 : index
    %c0_0 = arith.constant 0 : index
    %0 = memref.load %arg0[%c0, %c0_0] : memref<1x1xf32, #tpu.memory_space<smem>>
    %c0_i32 = arith.constant 0 : i32
    %c0_i32_1 = arith.constant 0 : i32
    %c64_i32 = arith.constant 64 : i32
    %1 = arith.addi %c0_i32_1, %c64_i32 : i32
    %c1_i32 = arith.constant 1 : i32
    %2 = scf.for %arg5 = %c0_i32_1 to %1 step %c1_i32 iter_args(%arg6 = %c0_i32) -> (i32)  : i32 {
      %68 = arith.index_cast %arg5 : i32 to index
      %69 = memref.load %arg1[%68] : memref<64xf32, #tpu.memory_space<smem>>
      %70 = arith.cmpf oge, %0, %69 : f32
      %71 = arith.extui %70 : i1 to i32
      %72 = arith.addi %arg6, %71 : i32
      scf.yield %72 : i32
    }
    %c64_i32_2 = arith.constant 64 : i32
    %c1_i32_3 = arith.constant 1 : i32
    %3 = arith.subi %2, %c1_i32_3 : i32
    %c0_i32_4 = arith.constant 0 : i32
    %c62_i32 = arith.constant 62 : i32
    %4 = arith.maxsi %c0_i32_4, %3 : i32
    %5 = arith.minsi %c62_i32, %4 : i32
    %6 = arith.index_cast %5 : i32 to index
    %7 = memref.load %arg1[%6] : memref<64xf32, #tpu.memory_space<smem>>
    %c1_i32_5 = arith.constant 1 : i32
    %8 = arith.addi %5, %c1_i32_5 : i32
    %9 = arith.index_cast %8 : i32 to index
    %10 = memref.load %arg1[%9] : memref<64xf32, #tpu.memory_space<smem>>
    %11 = arith.subf %10, %7 : f32
    %c392_i32 = arith.constant 392 : i32
    %12 = arith.addi %c392_i32, %5 : i32
    %13 = arith.index_cast %12 : i32 to index
    %c0_6 = arith.constant 0 : index
    %14 = vector.load %arg3[%13, %c0_6] : memref<520x128xf32, #tpu.memory_space<vmem>>, vector<2x128xf32>
    %15 = arith.subf %0, %7 : f32
    %16 = vector.broadcast %15 : f32 to vector<1x1xf32>
    %17 = vector.broadcast %11 : f32 to vector<1x1xf32>
    %cst = arith.constant 0.000000e+00 : f32
    %18 = vector.broadcast %cst : f32 to vector<1x1xf32>
    %19 = arith.cmpf oeq, %17, %18 : vector<1x1xf32>
    %cst_7 = arith.constant 1.000000e+00 : f32
    %20 = vector.broadcast %cst_7 : f32 to vector<1x1xf32>
    %21 = arith.select %19, %20, %17 : vector<1x1xi1>, vector<1x1xf32>
    %22 = arith.divf %16, %21 : vector<1x1xf32>
    %23 = vector.extract_strided_slice %14 {offsets = [0, 0], sizes = [1, 128], strides = [1, 1]} : vector<2x128xf32> to vector<1x128xf32>
    %24 = vector.extract_strided_slice %14 {offsets = [1, 0], sizes = [1, 128], strides = [1, 1]} : vector<2x128xf32> to vector<1x128xf32>
    %25 = vector.extract_strided_slice %14 {offsets = [0, 0], sizes = [1, 128], strides = [1, 1]} : vector<2x128xf32> to vector<1x128xf32>
    %26 = arith.subf %24, %25 : vector<1x128xf32>
    %27 = vector.broadcast %22 : vector<1x1xf32> to vector<1x128xf32>
    %28 = arith.mulf %27, %26 : vector<1x128xf32>
    %29 = arith.addf %23, %28 : vector<1x128xf32>
    %c1 = arith.constant 1 : index
    %c0_8 = arith.constant 0 : index
    %30 = vector.load %arg3[%c1, %c0_8] : memref<520x128xf32, #tpu.memory_space<vmem>>, vector<1x128xf32>
    %c0_9 = arith.constant 0 : index
    %c0_10 = arith.constant 0 : index
    %31 = vector.load %arg3[%c0_9, %c0_10] : memref<520x128xf32, #tpu.memory_space<vmem>>, vector<1x128xf32>
    %32 = vector.broadcast %0 : f32 to vector<1x128xf32>
    %33 = arith.mulf %32, %31 : vector<1x128xf32>
    %34 = arith.addf %30, %33 : vector<1x128xf32>
    %35 = arith.addf %34, %29 : vector<1x128xf32>
    %c0_11 = arith.constant 0 : index
    %c0_12 = arith.constant 0 : index
    %36 = vector.load %arg2[%c0_11, %c0_12] : memref<8x128xf32, #tpu.memory_space<vmem>>, vector<8x128xf32>
    %c8 = arith.constant 8 : index
    %c0_13 = arith.constant 0 : index
    %37 = vector.load %arg3[%c8, %c0_13] : memref<520x128xf32, #tpu.memory_space<vmem>>, vector<128x128xf32>
    %cst_14 = arith.constant dense<0.000000e+00> : vector<8x128xf32>
    %38 = tpu.matmul %36, %37, %cst_14 {dimension_numbers = #tpu.dot_dimension_numbers<[1], [0], [0], [1], [0, 0, 1, 1], [], []>} : vector<8x128xf32>, vector<128x128xf32>, vector<8x128xf32> -> vector<8x128xf32>
    %39 = vector.broadcast %35 : vector<1x128xf32> to vector<8x128xf32>
    %40 = arith.addf %38, %39 : vector<8x128xf32>
    %cst_15 = arith.constant 0.000000e+00 : f32
    %41 = vector.broadcast %cst_15 : f32 to vector<8x128xf32>
    %42 = arith.cmpf ogt, %40, %41 : vector<8x128xf32>
    %cst_16 = arith.constant 0.000000e+00 : f32
    %43 = vector.broadcast %cst_16 : f32 to vector<8x128xf32>
    %44 = arith.minimumf %40, %43 : vector<8x128xf32>
    %45 = math.exp %44 : vector<8x128xf32>
    %cst_17 = arith.constant 1.000000e+00 : f32
    %46 = vector.broadcast %cst_17 : f32 to vector<8x128xf32>
    %47 = arith.subf %45, %46 : vector<8x128xf32>
    %48 = arith.select %42, %40, %47 : vector<8x128xi1>, vector<8x128xf32>
    %c136 = arith.constant 136 : index
    %c0_18 = arith.constant 0 : index
    %49 = vector.load %arg3[%c136, %c0_18] : memref<520x128xf32, #tpu.memory_space<vmem>>, vector<128x128xf32>
    %cst_19 = arith.constant dense<0.000000e+00> : vector<8x128xf32>
    %50 = tpu.matmul %48, %49, %cst_19 {dimension_numbers = #tpu.dot_dimension_numbers<[1], [0], [0], [1], [0, 0, 1, 1], [], []>} : vector<8x128xf32>, vector<128x128xf32>, vector<8x128xf32> -> vector<8x128xf32>
    %c2 = arith.constant 2 : index
    %c0_20 = arith.constant 0 : index
    %51 = vector.load %arg3[%c2, %c0_20] : memref<520x128xf32, #tpu.memory_space<vmem>>, vector<1x128xf32>
    %52 = vector.broadcast %51 : vector<1x128xf32> to vector<8x128xf32>
    %53 = arith.addf %50, %52 : vector<8x128xf32>
    %cst_21 = arith.constant 0.000000e+00 : f32
    %54 = vector.broadcast %cst_21 : f32 to vector<8x128xf32>
    %55 = arith.cmpf ogt, %53, %54 : vector<8x128xf32>
    %cst_22 = arith.constant 0.000000e+00 : f32
    %56 = vector.broadcast %cst_22 : f32 to vector<8x128xf32>
    %57 = arith.minimumf %53, %56 : vector<8x128xf32>
    %58 = math.exp %57 : vector<8x128xf32>
    %cst_23 = arith.constant 1.000000e+00 : f32
    %59 = vector.broadcast %cst_23 : f32 to vector<8x128xf32>
    %60 = arith.subf %58, %59 : vector<8x128xf32>
    %61 = arith.select %55, %53, %60 : vector<8x128xi1>, vector<8x128xf32>
    %c264 = arith.constant 264 : index
    %c0_24 = arith.constant 0 : index
    %62 = vector.load %arg3[%c264, %c0_24] : memref<520x128xf32, #tpu.memory_space<vmem>>, vector<128x128xf32>
    %cst_25 = arith.constant dense<0.000000e+00> : vector<8x128xf32>
    %63 = tpu.matmul %61, %62, %cst_25 {dimension_numbers = #tpu.dot_dimension_numbers<[1], [0], [0], [1], [0, 0, 1, 1], [], []>} : vector<8x128xf32>, vector<128x128xf32>, vector<8x128xf32> -> vector<8x128xf32>
    %c3 = arith.constant 3 : index
    %c0_26 = arith.constant 0 : index
    %64 = vector.load %arg3[%c3, %c0_26] : memref<520x128xf32, #tpu.memory_space<vmem>>, vector<1x128xf32>
    %65 = vector.broadcast %64 : vector<1x128xf32> to vector<8x128xf32>
    %66 = arith.addf %63, %65 : vector<8x128xf32>
    %c0_27 = arith.constant 0 : index
    %c0_28 = arith.constant 0 : index
    %67 = vector.load %arg4[%c0_27, %c0_28] : memref<8x128xf32, #tpu.memory_space<vmem>>, vector<8x128xf32>
    tpu.vector_store %arg4[%c0_27, %c0_28], %66 {strides = array<i32>} : memref<8x128xf32, #tpu.memory_space<vmem>>, vector<8x128xf32>,
    return
  }
}

</mosaic_0001>

<bundles_post_ra>
// kernel: tpu_custom_call.1
= control target key start
LH: loop header
LB: loop body
LE: loop exit
PB: predicated region body
PF: predicated region fallthrough
CT: control target
= control target key end

     0   :  { %10 = vsyncpa [#allocation6], 0  ;;  %s492_s0 = inlined_call_operand.<no memory space> [shape: f32[1,1], index: 0, kind: input, shape index: {}]   ;;  %s493_s1 = inlined_call_operand.vmem [shape: f32[64], index: 1, kind: input, shape index: {}]   ;;  %s494_s2 = inlined_call_operand.hbm [shape: f32[8,128], index: 2, kind: input, shape index: {}]   ;;  %s495_s3 = inlined_call_operand.hbm [shape: f32[520,128], index: 3, kind: input, shape index: {}]   ;;  %s496_s4 = inlined_call_operand.hbm [shape: f32[8,128], index: 4, kind: output, shape index: {}]  }
   0x1   :  { %11 = vsyncpa [#allocation4], 0 }
   0x2   :  { %12 = vsyncpa [#allocation9], 0 }
   0x3   :  { %13 = vsyncpa [#allocation5], 0  ;;  %s21_s17 = sshll.u32 %s493_s1, 4  ;;  %s30_s20 = sshll.u32 %s494_s2, 4  ;;  %s22_s17 = int_to_ptr.vmem [resolvable:$true] %s21_s17  ;;  %s31_s20 = int_to_ptr.hbm [resolvable:$true] %s30_s20 }
   0x4   :  { %s426_s21 = smov [#allocation3]   ;;  %s427_s22 = smov [#allocation7]  }
   0x5   :  { %24 = dma.vmem_to_smem %s22_s17, 16, %s426_s21, [#allocation6]  }
   0x6   :  { %s32_s23 = sshll.u32 %s427_s22, 4  ;;  %s40_s26 = sshll.u32 %s495_s3, 4  ;;  %s33_s23 = int_to_ptr.vmem [resolvable:$true] %s32_s23  ;;  %s41_s26 = int_to_ptr.hbm [resolvable:$true] %s40_s26 }
   0x7   :  { %35 = dma.hbm_to_vmem [thread:$0]  %s31_s20, 128, %s33_s23, [#allocation4]  }
   0x8   :  { %s428_s27 = smov [#allocation8]   ;;  %s429_s1 = smov 128  }
   0x9   :  { %s42_s28 = sshll.u32 %s428_s27, 4  ;;  %s430_s29 = smov 8   ;;  %s43_s28 = int_to_ptr.vmem [resolvable:$true] %s42_s28 }
   0xa   :  { %48 = dma.hbm_to_vmem [thread:$0]  %s41_s26, 8320, %s43_s28, [#allocation9], %s429_s1, %s429_s1, %s430_s29  }
   0xb   :  { %410 = dma.done.wait [#allocation6], 16  }
   0xc   :  { %411 = vsyncadd [#allocation6], 4294967280 }
   0xd   :  { %412 = dma.done.wait [#allocation4], 128  }
   0xe   :  { %413 = vsyncadd [#allocation4], 4294967168 }
   0xf   :  { %414 = dma.done.wait [#allocation9], 8320  }
  0x10   :  { %415 = vsyncadd [#allocation9], 4294958976 }
  0x11   :  { %61 = sfence }
  0x12   :  { %s418_s2 = smov 0   ;;  %s422_s30 = smov 0  }
  0x13 LB: > { %s70_s3 = sld [smem:[#allocation3 + %s424_s30]]  ;;  %s68_s30 = sadd.s32 1, %s424_s30   ;;  %s424_s30 = sphi %s422_s30, %s68_s30   ;;  %s420_s2 = sphi %s418_s2, %s419_s2  }
  0x14   : > { %p65_p1 = scmp.ge.s32.totalorder %s68_s30, 64  }
  0x15   :  { %v137_v0 = vld [vmem:[#allocation8 + $0x80] sm:$0xff] (%p65_p1)  ;;  %v136_v1 = vld [vmem:[#allocation8 + $0x78] sm:$0xff] (%p65_p1)  ;;  %v135_v2 = vld [vmem:[#allocation8 + $0x70] sm:$0xff] (%p65_p1)  ;;  %v117_v53 = vstv (%p65_p1), %s492_s0  ;;  %s255_s23 = sshll.u32 (%p65_p1), %s496_s4, 4  ;;  %s256_s23 = int_to_ptr.hbm [resolvable:$true] %s255_s23 }
  0x16   :  { %139 = vmatpush.msra.mxu0 (%p65_p1), %v137_v0  ;;  %v134_v3 = vld [vmem:[#allocation8 + $0x68] sm:$0xff] (%p65_p1)  ;;  %v180_v4 = vld [vmem:[#allocation8 + $0x100] sm:$0xff] (%p65_p1)  ;;  %v179_v6 = vld [vmem:[#allocation8 + $0xf8] sm:$0xff] (%p65_p1) }
  0x17   :  { %v133_v5 = vld [vmem:[#allocation8 + $0x60] sm:$0xff] (%p65_p1)  ;;  %183 = vmatpush.msra.mxu1 (%p65_p1), %v180_v4  ;;  %v178_v7 = vld [vmem:[#allocation8 + $0xf0] sm:$0xff] (%p65_p1)  ;;  %v132_v8 = vld [vmem:[#allocation8 + $0x58] sm:$0xff] (%p65_p1) }
  0x18   :  { %140 = vmatpush.msra.mxu0 (%p65_p1), %v136_v1  ;;  %v177_v9 = vld [vmem:[#allocation8 + $0xe8] sm:$0xff] (%p65_p1)  ;;  %v131_v10 = vld [vmem:[#allocation8 + $0x50] sm:$0xff] (%p65_p1)  ;;  %v176_v11 = vld [vmem:[#allocation8 + $0xe0] sm:$0xff] (%p65_p1) }
  0x19   : > { %p71_p0 = scmp.ge.f32.partialorder %s492_s0, %s70_s3  ;;  %184 = vmatpush.msra.mxu1 (%p65_p1), %v179_v6  ;;  %v130_v12 = vld [vmem:[#allocation8 + $0x48] sm:$0xff] (%p65_p1)  ;;  %v175_v13 = vld [vmem:[#allocation8 + $0xd8] sm:$0xff] (%p65_p1)  ;;  %v129_v14 = vld [vmem:[#allocation8 + $0x40] sm:$0xff] (%p65_p1) }
  0x1a   :  { %141 = vmatpush.msra.mxu0 (%p65_p1), %v135_v2  ;;  %v174_v15 = vld [vmem:[#allocation8 + $0xd0] sm:$0xff] (%p65_p1)  ;;  %v128_v16 = vld [vmem:[#allocation8 + $0x38] sm:$0xff] (%p65_p1)  ;;  %v126_v18 = vld [vmem:[#allocation8 + $0x28] sm:$0xff] (%p65_p1) }
  0x1b   : > { %s72_s7 = scalar_select %p71_p0, 1, 0  ;;  %185 = vmatpush.msra.mxu1 (%p65_p1), %v178_v7  ;;  %v127_v17 = vld [vmem:[#allocation8 + $0x30] sm:$0xff] (%p65_p1)  ;;  %v125_v19 = vld [vmem:[#allocation8 + $0x20] sm:$0xff] (%p65_p1)  ;;  %v124_v20 = vld [vmem:[#allocation8 + $0x18] sm:$0xff] (%p65_p1) }
  0x1c   :  { %67 = sbr.rel (!%p65_p1) target bundleno = 19 (0x13), region = 56  ;;  %142 = vmatpush.msra.mxu0 (%p65_p1), %v134_v3  ;;  %v123_v21 = vld [vmem:[#allocation8 + $0x10] sm:$0xff] (%p65_p1)  ;;  %v122_v22 = vld [vmem:[#allocation8 + $0x8] sm:$0xff] (%p65_p1)  ;;  %v121_v23 = vld [vmem:[#allocation7] sm:$0xff] (%p65_p1) }
  0x1d   : > { %s469_s2 = sadd.s32 %s420_s2, %s72_s7   ;;  %186 = vmatpush.msra.mxu1 (%p65_p1), %v177_v9  ;;  %v173_v33 = vld [vmem:[#allocation8 + $0xc8] sm:$0xff] (%p65_p1)  ;;  %v172_v35 = vld [vmem:[#allocation8 + $0xc0] sm:$0xff] (%p65_p1)  ;;  %v171_v39 = vld [vmem:[#allocation8 + $0xb8] sm:$0xff] (%p65_p1) }
  0x1e   : > { %s497_s8 = smov %s469_s2  ;;  %143 = vmatpush.msra.mxu0 (%p65_p1), %v133_v5  ;;  %v170_v41 = vld [vmem:[#allocation8 + $0xb0] sm:$0xff] (%p65_p1)  ;;  %v169_v44 = vld [vmem:[#allocation8 + $0xa8] sm:$0xff] (%p65_p1)  ;;  %v168_v45 = vld [vmem:[#allocation8 + $0xa0] sm:$0xff] (%p65_p1) }
  0x1f   : > { %s419_s2 = smov %s497_s8   ;;  %187 = vmatpush.msra.mxu1 (%p65_p1), %v176_v11  ;;  %s277_s9 = sadd.s32 (%p65_p1), 4294967295, %s497_s8  ;;  %v167_v48 = vld [vmem:[#allocation8 + $0x98] sm:$0xff] (%p65_p1)  ;;  %v166_v49 = vld [vmem:[#allocation8 + $0x90] sm:$0xff] (%p65_p1)  ;;  %v165_v51 = vld [vmem:[#allocation8 + $0x88] sm:$0xff] (%p65_p1) }
  0x20   :  { %144 = vmatpush.msra.mxu0 (%p65_p1), %v132_v8  ;;  %p75_p2 = scmp.gt.s32.totalorder (%p65_p1), %s277_s9, 0  ;;  %p278_p3 = scmp.lt.s32.totalorder (%p65_p1), %s277_s9, 62  ;;  %v116_v52 = vld [vmem:[#allocation8] sm:$0x1] (%p65_p1)  ;;  %v223_v57 = vld [vmem:[#allocation8 + $0x178] sm:$0xff] (%p65_p1)  ;;  %v222_v59 = vld [vmem:[#allocation8 + $0x170] sm:$0xff] (%p65_p1) }
  0x21   :  { %188 = vmatpush.msra.mxu1 %v175_v13  ;;  %v118_v55 = vmul.f32 %v117_v53, %v116_v52  ;;  %v224_v56 = vld [vmem:[#allocation8 + $0x180] sm:$0xff]  ;;  %v221_v62 = vld [vmem:[#allocation8 + $0x168] sm:$0xff]  ;;  %v219_v1 = vld [vmem:[#allocation8 + $0x158] sm:$0xff] }
  0x22   :  { %145 = vmatpush.msra.mxu0 %v131_v10  ;;  %s501_s9 = smov (!%p75_p2, %s277_s9), 0  ;;  %v115_v58 = vld [vmem:[#allocation8 + $0x1] sm:$0x1]  ;;  %227 = vmatpush.msra.mxu2 %v224_v56  ;;  %v218_v2 = vld [vmem:[#allocation8 + $0x150] sm:$0xff]  ;;  %v217_v11 = vld [vmem:[#allocation8 + $0x148] sm:$0xff] }
  0x23   :  { %189 = vmatpush.msra.mxu1 %v174_v15  ;;  %s503_s9 = smov (!%p278_p3, %s501_s9), 62  ;;  %v119_v61 = vadd.f32 %v118_v55, %v115_v58  ;;  %v220_v63 = vld [vmem:[#allocation8 + $0x160] sm:$0xff]  ;;  %v215_v13 = vld [vmem:[#allocation8 + $0x138] sm:$0xff]  ;;  %v213_v15 = vld [vmem:[#allocation8 + $0x128] sm:$0xff] }
  0x24   :  { %146 = vmatpush.msra.mxu0 %v130_v12  ;;  %s80_s10 = sadd.s32 1, %s503_s9  ;;  %s473_s11 = sld [smem:[#allocation3 + %s503_s9]]  ;;  %228 = vmatpush.msra.mxu2 %v223_v57  ;;  %v216_v12 = vld [vmem:[#allocation8 + $0x140] sm:$0xff] }
  0x25   :  { %s81_s12 = sld [smem:[#allocation3 + %s80_s10]]  ;;  %190 = vmatpush.msra.mxu1 %v173_v33  ;;  %s267_s14 = scalar_lea.vmem [#allocation8], %s503_s9 }
  0x26   :  { %147 = vmatpush.msra.mxu0 %v129_v14  ;;  %v283_v36 = vld [vmem:[%s267_s14 + $0x188] sm:$0x3]  ;;  %229 = vmatpush.msra.mxu2 %v222_v59  ;;  %v214_v14 = vld [vmem:[#allocation8 + $0x130] sm:$0xff] }
  0x27   :  { %191 = vmatpush.msra.mxu1 %v172_v35  ;;  %v107_v40 = vrot.slane %v283_v36, 7 }
  0x28   :  { %148 = vmatpush.msra.mxu0 %v128_v16  ;;  %230 = vmatpush.msra.mxu2 %v221_v62  ;;  %v212_v16 = vld [vmem:[#allocation8 + $0x120] sm:$0xff] }
  0x29   :  { %192 = vmatpush.msra.mxu1 %v171_v39  ;;  %v109_v47 = vsub.f32 %v283_v36, %v107_v40 }
  0x2a   :  { %149 = vmatpush.msra.mxu0 %v127_v17  ;;  %s86_s17 = ssub.f32 %s492_s0, %s473_s11  ;;  %231 = vmatpush.msra.mxu2 %v220_v63  ;;  %v211_v17 = vld [vmem:[#allocation8 + $0x118] sm:$0xff]  ;;  %s431_s0 = smov [#allocation10]  }
  0x2b   :  { %s82_s13 = ssub.f32 %s81_s12, %s473_s11  ;;  %193 = vmatpush.msra.mxu1 %v170_v41  ;;  %s253_s20 = sshll.u32 %s431_s0, 4  ;;  %s254_s20 = int_to_ptr.vmem [resolvable:$true] %s253_s20 }
  0x2c   :  { %150 = vmatpush.msra.mxu0 %v126_v18  ;;  %v87_v42 = vstv %s86_s17  ;;  %232 = vmatpush.msra.mxu2 %v219_v1  ;;  %v210_v18 = vld [vmem:[#allocation8 + $0x110] sm:$0xff] }
  0x2d   :  { %v88_v24 = vstv %s82_s13  ;;  %194 = vmatpush.msra.mxu1 %v169_v44 }
  0x2e   :  { %151 = vmatpush.msra.mxu0 %v125_v19  ;;  %vm89_vm0 = vcmp.eq.f32.partialorder %v88_v24, 0.0  ;;  %233 = vmatpush.msra.mxu2 %v218_v2  ;;  %v209_v19 = vld [vmem:[#allocation8 + $0x108] sm:$0xff] }
  0x2f   :  { %v90_v25 = vsel %vm89_vm0, 1.0, %v88_v24  ;;  %195 = vmatpush.msra.mxu1 %v168_v45 }
  0x30   :  { %152 = vmatpush.msra.mxu0 %v124_v20  ;;  %312 = vrcp.f32 %v90_v25  ;;  %vm96_vm1 = vweird.f32 %v90_v25  ;;  %v102_v30 = vand.u32 2147483648, %v90_v25  ;;  %v100_v32 = vand.u32 2147483647, %v90_v25  ;;  %234 = vmatpush.msra.mxu2 %v217_v11  ;;  %v310_v20 = vld [vmem:[#allocation8 + $0x2] ss:$0 sm:$0xff] }
  0x31   :  { %196 = vmatpush.msra.mxu1 %v167_v48 }
  0x32   :  { %153 = vmatpush.msra.mxu0 %v123_v21  ;;  %v103_v37 = vor.u32 1.1754944e-38, %v102_v30  ;;  %vm101_vm4 = vcmp.eq.f32.partialorder %v100_v32, 8.507059e+37  ;;  %235 = vmatpush.msra.mxu2 %v216_v12 }
  0x33   :  { %197 = vmatpush.msra.mxu1 %v166_v49 }
  0x34   :  { %154 = vmatpush.msra.mxu0 %v122_v22  ;;  %236 = vmatpush.msra.mxu2 %v215_v13 }
  0x35   :  { %155 = vmatmul.f32.vlgmr.msra.gmra.mxu0 %v121_v23  ;;  %198 = vmatpush.msra.mxu1 %v165_v51 }
  0x36   :  { %v313_v26 = vpop.eup %312  ;;  %237 = vmatpush.msra.mxu2 %v214_v14 }
  0x37   :  { %v92_v27 = vmul.f32 %v313_v26, %v90_v25  ;;  %vm97_vm2 = vweird.f32 %v313_v26 }
  0x38   :  { %vm476_vm3 = vmor %vm96_vm1, %vm97_vm2  ;;  %238 = vmatpush.msra.mxu2 %v213_v15 }
  0x39   :  { %v93_v28 = vsub.f32 1.0, %v92_v27 }
  0x3a   :  { %239 = vmatpush.msra.mxu2 %v212_v16 }
  0x3b   :  { %v94_v29 = vmul.f32 %v313_v26, %v93_v28  ;;  %v311_v28 = vld [vmem:[#allocation8 + $0x3] ss:$0 sm:$0xff] }
  0x3c   :  { %240 = vmatpush.msra.mxu2 %v211_v17 }
  0x3d   :  { %v95_v31 = vadd.f32 %v313_v26, %v94_v29 }
  0x3e   :  { %241 = vmatpush.msra.mxu2 %v210_v18 }
  0x3f   :  { %v99_v38 = vsel %vm476_vm3, %v313_v26, %v95_v31 }
  0x40   :  { %v104_v43 = vsel %vm101_vm4, %v103_v37, %v99_v38  ;;  %242 = vmatpush.msra.mxu2 %v209_v19 }
  0x41   :  { %v105_v46 = vmul.f32 %v104_v43, %v87_v42 }
  0x43   :  { %v110_v50 = vmul.f32 %v109_v47, %v105_v46 }
  0x45   :  { %v112_v54 = vrot.slane %v110_v50, 1 }
  0x47   :  { %v114_v60 = vadd.f32 %v283_v36, %v112_v54 }
  0x49   :  { %v120_v0 = vadd.f32 %v119_v61, %v114_v60 }
  0x4b   :  { %v138_v3 = vperm.slane %v120_v0, 0 }
  0xb2   :  { %v156_v4 = vpop.f32.mrf.mxu0 }
  0xb3   :  { %v157_v5 = vadd.f32 %v156_v4, %v138_v3 }
  0xb5   :  { %v160_v6 = vmin.f32 %v157_v5, 0.0  ;;  %vm159_vm5 = vcmp.gt.f32.partialorder %v157_v5, 0.0 }
  0xb7   :  { %v161_v7 = vmul.f32 1.442695, %v160_v6 }
  0xb9   :  { %314 = vpow2.f32 %v161_v7 }
  0xbf   :  { %v315_v8 = vpop.eup %314 }
  0xc0   :  { %v284_v9 = vadd.f32 -1.0, %v315_v8 }
  0xc2   :  { %v164_v10 = vsel %vm159_vm5, %v157_v5, %v284_v9 }
  0xc3   :  { %199 = vmatmul.f32.vlgmr.msra.gmra.mxu1 %v164_v10 }
 0x140   :  { %v200_v21 = vpop.f32.mrf.mxu1 }
 0x141   :  { %v201_v22 = vadd.f32 %v310_v20, %v200_v21 }
 0x143   :  { %v204_v23 = vmin.f32 %v201_v22, 0.0  ;;  %vm203_vm6 = vcmp.gt.f32.partialorder %v201_v22, 0.0 }
 0x145   :  { %v205_v24 = vmul.f32 1.442695, %v204_v23 }
 0x147   :  { %316 = vpow2.f32 %v205_v24 }
 0x14d   :  { %v317_v25 = vpop.eup %316 }
 0x14e   :  { %v285_v26 = vadd.f32 -1.0, %v317_v25 }
 0x150   :  { %v208_v27 = vsel %vm203_vm6, %v201_v22, %v285_v26 }
 0x151   :  { %243 = vmatmul.f32.vlgmr.msra.gmra.mxu2 %v208_v27 }
 0x1d4   :  { %v244_v29 = vpop.f32.mrf.mxu2 }
 0x1d5   :  { %v245_v30 = vadd.f32 %v311_v28, %v244_v29 }
 0x1d7   :  { %247 = vst [vmem:[#allocation10] sm:$0xff] %v245_v30 }
 0x1d8   :  { %258 = dma.vmem_to_hbm [thread:$0]  %s254_s20, 128, %s256_s23, [#allocation5]  }
 0x1d9   :  { %416 = dma.done.wait [#allocation5], 128  }
 0x1da   :  { %417 = vsyncadd [#allocation5], 4294967168 }
 0x1db   :  { %263 = vsyncpa [#allocation4], 1 }
 0x1dc   :  { %264 = vsyncpa [#allocation9], 1 }
 0x1dd   :  { %265 = vsyncpa [#allocation5], 1 }
 0x1de   :  { %266 = vsyncpa [#allocation6], 1 }

</bundles_post_ra>
